<compile_context>
chip_gen: v7x
topology: tpu7x:2x2x1
jax: 0.10.0
libtpu: 0.0.40
codegen_flags: <defaults>
</compile_context>

<pallas_src>
import functools
import math

import jax
import jax.numpy as jnp
from jax.experimental import pallas as pl
from jax.experimental.pallas import tpu as pltpu

BN_EPS = 1e-5
LN_EPS = 1e-5
_LANE = 128
_SUBLANE = 8
_MIB = 1024 * 1024


def _round_up(x, m):
    return (x + m - 1) // m * m


def _vmem_capacity_bytes():
    try:
        return int(pltpu.get_tpu_info().vmem_capacity_bytes)
    except Exception:
        return 64 * _MIB          # conservative: v7x per-core VMEM


def _vmem_limit(footprint_bytes, capacity):
    # footprint + 25% headroom, floor 32 MiB, ceiling 0.75 * physical VMEM.
    ceiling = max(int(0.75 * capacity), 32 * _MIB)
    return int(min(max(int(1.25 * footprint_bytes), 32 * _MIB), ceiling))


def _pick_tile(n, tile_n):
    """Batch tile: 512-row default, 128-aligned, >=2 grid steps when possible."""
    n8 = _round_up(n, _SUBLANE)
    if tile_n is not None:
        return min(_round_up(tile_n, _SUBLANE), n8)
    if n8 <= 2 * _LANE:
        return n8                                  # tiny batch: one block
    tile = min(512, _round_up((n8 + 1) // 2, _LANE))  # >=2 steps for v7x's 2 TCs
    return _round_up(tile, _LANE)


# ---------------------------------------------------------------------------
# Fused kernel: whole MLP over one batch tile (affine already folded into W,b)
# ---------------------------------------------------------------------------
def _fused_mlp_kernel(x_ref, *refs, n_layers, use_bn, use_ln, leaky_relu):
    """refs = (w0, b0, w1, b1, ..., out_ref).

    use_bn  : whole-batch BN stats — only valid when the tile is the full,
              unpadded batch (wrapper guarantees this).
    use_ln  : per-row LayerNorm.  Padded rows (zero) give finite values and
              are sliced off by the wrapper.
    """
    o_ref = refs[-1]
    h = x_ref[...].astype(jnp.float32)
    rows = h.shape[0]

    for i in range(n_layers):
        w = refs[2 * i][...]
        b = refs[2 * i + 1][...]

        if use_bn:
            # Column sums on the MXU (ones-row matmul) instead of a
            # cross-sublane XLU reduction; two-pass (centered) variance.
            ones = jnp.ones((1, rows), jnp.float32)
            inv_n = 1.0 / rows
            mean = jnp.dot(ones, h, preferred_element_type=jnp.float32) * inv_n
            hc = h - mean
            var = jnp.dot(ones, hc * hc, preferred_element_type=jnp.float32) * inv_n
            h = hc * jax.lax.rsqrt(var + BN_EPS)
        elif use_ln:
            inv_f = 1.0 / h.shape[1]
            mean = jnp.sum(h, axis=1, keepdims=True) * inv_f
            hc = h - mean
            var = jnp.sum(hc * hc, axis=1, keepdims=True) * inv_f
            h = hc * jax.lax.rsqrt(var + LN_EPS)

        # Feed the MXU in the weights' native dtype (bf16 weights -> bf16 MXU),
        # accumulate in f32.
        y = jnp.dot(h.astype(w.dtype), w, preferred_element_type=jnp.float32)
        y = y + b.astype(jnp.float32)
        if i < n_layers - 1:                       # no activation after last layer
            y = jnp.where(y >= 0.0, y, 0.01 * y) if leaky_relu else jnp.maximum(y, 0.0)
        h = y

    o_ref[...] = h.astype(o_ref.dtype)


def _fused_call(x, folded, *, use_bn, use_ln, leaky_relu, tile, grid_steps,
                capacity, parallel):
    n_layers = len(folded)
    n, f0 = x.shape
    n_rows = tile * grid_steps
    dtype = x.dtype
    itemsize = jnp.dtype(dtype).itemsize
    out_cols = folded[-1][0].shape[1]

    if n_rows != n:                                # zero rows only; no feature pad
        x = jnp.pad(x, ((0, n_rows - n), (0, 0)))

    flat_inputs = [x]
    for w, b in folded:
        flat_inputs += [w, b]

    # Cost estimate over the shapes the kernel actually executes.
    feat = [f0] + [w.shape[1] for w, _ in folded]
    flops = sum(2 * n_rows * feat[i] * feat[i + 1] for i in range(n_layers))
    if use_bn or use_ln:
        flops += sum(8 * n_rows * feat[i] for i in range(n_layers))
    transcendentals = (sum(feat[:-1]) if use_bn
                       else (n_rows * n_layers if use_ln else 0))
    param_bytes = sum(w.size * w.dtype.itemsize + b.size * b.dtype.itemsize
                      for w, b in folded)
    bytes_accessed = n_rows * (f0 + out_cols) * itemsize + param_bytes
    cost = pl.CostEstimate(flops=int(flops), transcendentals=int(transcendentals),
                           bytes_accessed=int(bytes_accessed))

    footprint = (2 * tile * (f0 + out_cols) * itemsize   # double-buffered x / out
                 + 4 * tile * max(feat) * 4              # f32 working slabs
                 + param_bytes)                          # Buffered(1) constants
    vmem_limit = _vmem_limit(footprint, capacity)

    kernel = functools.partial(_fused_mlp_kernel, n_layers=n_layers,
                               use_bn=use_bn, use_ln=use_ln, leaky_relu=leaky_relu)
    out_shape = jax.ShapeDtypeStruct((n_rows, out_cols), dtype)
    const = lambda i: (0, 0)

    def run(buffered):
        pm = dict(pipeline_mode=pl.Buffered(1)) if buffered else {}
        in_specs = [pl.BlockSpec((tile, f0), lambda i: (i, 0))]
        for w, b in folded:
            in_specs.append(pl.BlockSpec(w.shape, const, **pm))
            in_specs.append(pl.BlockSpec(b.shape, const, **pm))
        out_spec = pl.BlockSpec((tile, out_cols), lambda i: (i, 0))
        return pl.pallas_call(
            kernel,
            out_shape=out_shape,
            grid_spec=pltpu.PrefetchScalarGridSpec(
                num_scalar_prefetch=0,
                grid=(grid_steps,),
                in_specs=in_specs,
                out_specs=out_spec),
            compiler_params=pltpu.CompilerParams(
                dimension_semantics=(("parallel",) if parallel else ("arbitrary",)),
                vmem_limit_bytes=vmem_limit),
            cost_estimate=cost,
        )(*flat_inputs)

    try:
        return run(True)
    except Exception:
        # Fallback for Mosaic builds that reject Buffered(1) single-buffering.
        return run(False)


# ---------------------------------------------------------------------------
# BN fallback: per-layer two-phase kernel (stats pass, then apply pass) so the
# batch grid still tiles even when the whole batch does not fit in VMEM.
# ---------------------------------------------------------------------------
def _bn_layer_kernel(x_ref, w_ref, b_ref, o_ref, sum_ref, ssq_ref, *,
                     n_valid, tile, mask_rows, apply_act, leaky_relu):
    phase = pl.program_id(0)
    i = pl.program_id(1)

    @pl.when((phase == 0) & (i == 0))
    def _init():
        sum_ref[...] = jnp.zeros_like(sum_ref)
        ssq_ref[...] = jnp.zeros_like(ssq_ref)

    @pl.when(phase == 0)
    def _stats():
        h = x_ref[...].astype(jnp.float32)
        if mask_rows:
            # Mask padded rows of the last tile directly in the ones-vector.
            col = jax.lax.broadcasted_iota(jnp.int32, (1, tile), 1) + i * tile
            ones = (col < n_valid).astype(jnp.float32)
        else:
            ones = jnp.ones((1, tile), jnp.float32)
        # Column sums on the MXU.
        sum_ref[...] += jnp.dot(ones, h, preferred_element_type=jnp.float32)
        ssq_ref[...] += jnp.dot(ones, h * h, preferred_element_type=jnp.float32)

    @pl.when(phase == 1)
    def _apply():
        h = x_ref[...].astype(jnp.float32)
        inv_n = 1.0 / n_valid
        mean = sum_ref[...] * inv_n
        var = jnp.maximum(ssq_ref[...] * inv_n - mean * mean, 0.0)
        hn = (h - mean) * jax.lax.rsqrt(var + BN_EPS)
        y = jnp.dot(hn.astype(w_ref.dtype), w_ref[...],
                    preferred_element_type=jnp.float32)
        y = y + b_ref[...].astype(jnp.float32)
        if apply_act:
            y = jnp.where(y >= 0.0, y, 0.01 * y) if leaky_relu else jnp.maximum(y, 0.0)
        o_ref[...] = y.astype(o_ref.dtype)


def _bn_layer_call(h, w, b, *, n_valid, tile, apply_act, leaky_relu, capacity):
    n_rows, f_in = h.shape
    f_out = w.shape[1]
    dtype = h.dtype
    itemsize = jnp.dtype(dtype).itemsize
    n_tiles = n_rows // tile

    flops = 2 * n_rows * f_in * f_out + 10 * n_rows * f_in
    bytes_accessed = ((2 * n_rows * f_in + n_rows * f_out) * itemsize
                      + (w.size + b.size) * w.dtype.itemsize)
    cost = pl.CostEstimate(flops=int(flops), transcendentals=int(f_in),
                           bytes_accessed=int(bytes_accessed))
    footprint = (2 * tile * (f_in + f_out) * itemsize
                 + 4 * tile * max(f_in, f_out) * 4
                 + (w.size + b.size) * w.dtype.itemsize + 8 * f_in)
    vmem_limit = _vmem_limit(footprint, capacity)

    kernel = functools.partial(_bn_layer_kernel, n_valid=n_valid, tile=tile,
                               mask_rows=(n_rows != n_valid),
                               apply_act=apply_act, leaky_relu=leaky_relu)
    const = lambda p, i: (0, 0)

    def run(buffered):
        pm = dict(pipeline_mode=pl.Buffered(1)) if buffered else {}
        return pl.pallas_call(
            kernel,
            out_shape=jax.ShapeDtypeStruct((n_rows, f_out), dtype),
            grid_spec=pltpu.PrefetchScalarGridSpec(
                num_scalar_prefetch=0,
                grid=(2, n_tiles),                      # (phase, batch tile)
                in_specs=[
                    pl.BlockSpec((tile, f_in), lambda p, i: (i, 0)),
                    pl.BlockSpec((f_in, f_out), const, **pm),
                    pl.BlockSpec((1, f_out), const, **pm),
                ],
                # Output block stays parked at 0 during the stats phase (p*i==0)
                # so nothing is flushed until phase 1 writes each tile.
                out_specs=pl.BlockSpec((tile, f_out), lambda p, i: (p * i, 0)),
                scratch_shapes=[pltpu.VMEM((1, f_in), jnp.float32),
                                pltpu.VMEM((1, f_in), jnp.float32)]),
            compiler_params=pltpu.CompilerParams(
                dimension_semantics=("arbitrary", "arbitrary"),
                vmem_limit_bytes=vmem_limit),
            cost_estimate=cost,
        )(h, w, b)

    try:
        return run(True)
    except Exception:
        return run(False)


# ---------------------------------------------------------------------------
# Public wrapper
# ---------------------------------------------------------------------------
def mlp_forward(x, params, *, bn=True, layer_norm=False, leaky_relu=False,
                tile_n=None, bn_whole_batch=None):
    """Pallas forward pass matching the PyTorch MLP module (training-mode BN)."""
    n, f0 = x.shape
    n_layers = len(params)
    in_feats = tuple(int(p["w_t"].shape[0]) for p in params)
    out_feats = tuple(int(p["w_t"].shape[1]) for p in params)
    assert in_feats[0] == f0
    use_ln = layer_norm and not bn
    use_norm = bn or use_ln

    dtype = x.dtype
    itemsize = jnp.dtype(dtype).itemsize
    out_last = out_feats[-1]
    out_last_pad = _round_up(out_last, _LANE)      # lane-dense final store
    capacity = _vmem_capacity_bytes()

    # Fold the norm affine into the linear layer: (x̂·γ + β)W + b = x̂·(γ⊙W) + (βW + b).
    # Only the FINAL output feature dim is zero-padded (to 128 lanes).
    folded = []
    for li, p in enumerate(params):
        w32 = p["w_t"].astype(jnp.float32)
        b32 = p["b"].astype(jnp.float32)
        if use_norm:
            b_eff = p["beta"].astype(jnp.float32) @ w32 + b32
            w_eff = p["gamma"].astype(jnp.float32)[:, None] * w32
        else:
            w_eff, b_eff = w32, b32
        if li == n_layers - 1 and out_last_pad != out_last:
            w_eff = jnp.pad(w_eff, ((0, 0), (0, out_last_pad - out_last)))
            b_eff = jnp.pad(b_eff, (0, out_last_pad - out_last))
        folded.append((w_eff.astype(p["w_t"].dtype),
                       b_eff.reshape(1, -1).astype(p["b"].dtype)))

    param_bytes = sum(w.size * w.dtype.itemsize + bb.size * bb.dtype.itemsize
                      for w, bb in folded)
    max_f = max(max(in_feats), out_last_pad)

    if bn:
        # Whole-batch fused kernel only if it fits a generation-aware VMEM budget.
        whole_fp = (2 * n * (f0 + out_last_pad) * itemsize
                    + 4 * n * max_f * 4 + param_bytes)
        whole = (bn_whole_batch if bn_whole_batch is not None
                 else whole_fp <= int(0.70 * capacity))
        if whole:
            y = _fused_call(x, folded, use_bn=True, use_ln=False,
                            leaky_relu=leaky_relu, tile=n, grid_steps=1,
                            capacity=capacity, parallel=False)
            return y[:n, :out_last]
        # Large batch: per-layer two-phase kernels over a tiled batch grid.
        tile = _pick_tile(n, tile_n)
        n_pad = _round_up(_round_up(n, _SUBLANE), tile)
        h = x if n_pad == n else jnp.pad(x, ((0, n_pad - n), (0, 0)))
        for li, (w, bb) in enumerate(folded):
            h = _bn_layer_call(h, w, bb, n_valid=n, tile=tile,
                               apply_act=(li < n_layers - 1),
                               leaky_relu=leaky_relu, capacity=capacity)
        return h[:n, :out_last]

    # LayerNorm / no-norm: rows independent -> batch-tiled parallel grid.
    tile = _pick_tile(n, tile_n)
    n_pad = _round_up(_round_up(n, _SUBLANE), tile)
    y = _fused_call(x, folded, use_bn=False, use_ln=use_ln,
                    leaky_relu=leaky_relu, tile=tile, grid_steps=n_pad // tile,
                    capacity=capacity, parallel=True)
    return y[:n, :out_last]


# ---------------------------------------------------------------------------
# Parameter init + pure-jnp reference
# ---------------------------------------------------------------------------
def init_mlp_params(key, mlp_spec, dtype=jnp.float32):
    """Linear: kaiming-uniform-ish; norm gamma=1 / beta=0 (PyTorch defaults).
    Weights pre-transposed to (in, out)."""
    params = []
    for i in range(len(mlp_spec) - 1):
        f_in, f_out = mlp_spec[i], mlp_spec[i + 1]
        key, kw, kb = jax.random.split(key, 3)
        bound = 1.0 / math.sqrt(f_in)
        w = jax.random.uniform(kw, (f_out, f_in), dtype, -bound, bound)
        b = jax.random.uniform(kb, (f_out,), dtype, -bound, bound)
        params.append({"w_t": w.T, "b": b,
                       "gamma": jnp.ones((f_in,), dtype),
                       "beta": jnp.zeros((f_in,), dtype)})
    return params


def mlp_forward_ref(x, params, *, bn=True, layer_norm=False, leaky_relu=False):
    n_layers = len(params)
    h = x.astype(jnp.float32)
    for i, p in enumerate(params):
        if bn:
            mean = jnp.mean(h, axis=0, keepdims=True)
            var = jnp.mean((h - mean) ** 2, axis=0, keepdims=True)
            h = (h - mean) / jnp.sqrt(var + BN_EPS)
            h = h * p["gamma"].reshape(1, -1) + p["beta"].reshape(1, -1)
        elif layer_norm:
            mean = jnp.mean(h, axis=1, keepdims=True)
            var = jnp.mean((h - mean) ** 2, axis=1, keepdims=True)
            h = (h - mean) / jnp.sqrt(var + LN_EPS)
            h = h * p["gamma"].reshape(1, -1) + p["beta"].reshape(1, -1)
        h = h @ p["w_t"].astype(jnp.float32) + p["b"].reshape(1, -1)
        if i < n_layers - 1:
            h = jnp.where(h >= 0, h, 0.01 * h) if leaky_relu else jnp.maximum(h, 0.0)
    return h


if __name__ == "__main__":
    mlp_spec = [16, 32, 64, 8]

    key = jax.random.PRNGKey(0)
    params = init_mlp_params(key, mlp_spec)
    # Randomize the norm affine so the fold of gamma/beta into W/b is exercised.
    for p in params:
        key, kg, kb = jax.random.split(key, 3)
        p["gamma"] = 1.0 + 0.1 * jax.random.normal(kg, p["gamma"].shape, jnp.float32)
        p["beta"] = 0.1 * jax.random.normal(kb, p["beta"].shape, jnp.float32)

    # 1) Default config: BatchNorm1d + ReLU, whole-batch fused kernel.
    key, kx = jax.random.split(key)
    x = jax.random.normal(kx, (8, mlp_spec[0]), jnp.float32)
    out = jax.block_until_ready(mlp_forward(x, params, bn=True))
    ref = mlp_forward_ref(x, params, bn=True)
    assert out.shape == (8, mlp_spec[-1]), out.shape
    assert jnp.allclose(out, ref, atol=1e-4, rtol=1e-4), "BN fused mismatch"

    # 2) BN large-batch strategy (forced): per-layer two-phase tiled kernels,
    #    with a ragged batch (20 rows, tile 8) exercising the row masking.
    key, kx2 = jax.random.split(key)
    x2 = jax.random.normal(kx2, (20, mlp_spec[0]), jnp.float32)
    out2 = jax.block_until_ready(
        mlp_forward(x2, params, bn=True, bn_whole_batch=False, tile_n=8))
    ref2 = mlp_forward_ref(x2, params, bn=True)
    assert out2.shape == (20, mlp_spec[-1]), out2.shape
    assert jnp.allclose(out2, ref2, atol=1e-4, rtol=1e-4), "BN tiled mismatch"

    # 3) LayerNorm + LeakyReLU, batch-tiled parallel grid (2 steps).
    key, kx3 = jax.random.split(key)
    x3 = jax.random.normal(kx3, (16, mlp_spec[0]), jnp.float32)
    out3 = jax.block_until_ready(
        mlp_forward(x3, params, bn=False, layer_norm=True, leaky_relu=True, tile_n=8))
    ref3 = mlp_forward_ref(x3, params, bn=False, layer_norm=True, leaky_relu=True)
    assert out3.shape == (16, mlp_spec[-1]), out3.shape
    assert jnp.allclose(out3, ref3, atol=1e-4, rtol=1e-4), "LN config mismatch"

    # 4) No normalization at all (bn=False, layer_norm=False).
    out4 = jax.block_until_ready(mlp_forward(x3, params, bn=False, layer_norm=False))
    ref4 = mlp_forward_ref(x3, params, bn=False, layer_norm=False)
    assert jnp.allclose(out4, ref4, atol=1e-4, rtol=1e-4), "no-norm config mismatch"

    print("KERNEL_OK")
</pallas_src>

<mosaic_0001>
module attributes {stable_mosaic.version = 11 : i64} {
  func.func @_fused_mlp_kernel(%arg0: i32, %arg1: memref<8x16xf32, #tpu.memory_space<vmem>>, %arg2: memref<16x32xf32, #tpu.memory_space<vmem>>, %arg3: memref<1x32xf32, #tpu.memory_space<vmem>>, %arg4: memref<32x64xf32, #tpu.memory_space<vmem>>, %arg5: memref<1x64xf32, #tpu.memory_space<vmem>>, %arg6: memref<64x128xf32, #tpu.memory_space<vmem>>, %arg7: memref<1x128xf32, #tpu.memory_space<vmem>>, %arg8: memref<8x128xf32, #tpu.memory_space<vmem>>) attributes {dimension_semantics = [#tpu.dimension_semantics<arbitrary>], iteration_bounds = array<i64: 1>, scalar_prefetch = 0 : i64, scratch_operands = 0 : i64, tpu.core_type = #tpu.core_type<tc>, window_params = [{transform_indices = @transform_0, window_bounds = array<i64: 8, 16>}, {pipeline_mode = #tpu.pipeline_mode<synchronous>, transform_indices = @transform_1, window_bounds = array<i64: 16, 32>}, {pipeline_mode = #tpu.pipeline_mode<synchronous>, transform_indices = @transform_2, window_bounds = array<i64: 1, 32>}, {pipeline_mode = #tpu.pipeline_mode<synchronous>, transform_indices = @transform_3, window_bounds = array<i64: 32, 64>}, {pipeline_mode = #tpu.pipeline_mode<synchronous>, transform_indices = @transform_4, window_bounds = array<i64: 1, 64>}, {pipeline_mode = #tpu.pipeline_mode<synchronous>, transform_indices = @transform_5, window_bounds = array<i64: 64, 128>}, {pipeline_mode = #tpu.pipeline_mode<synchronous>, transform_indices = @transform_6, window_bounds = array<i64: 1, 128>}, {transform_indices = @transform_7, window_bounds = array<i64: 8, 128>}]} {
    %c0 = arith.constant 0 : index
    %c0_0 = arith.constant 0 : index
    %0 = vector.load %arg1[%c0, %c0_0] : memref<8x16xf32, #tpu.memory_space<vmem>>, vector<8x16xf32>
    %c0_1 = arith.constant 0 : index
    %c0_2 = arith.constant 0 : index
    %1 = vector.load %arg2[%c0_1, %c0_2] : memref<16x32xf32, #tpu.memory_space<vmem>>, vector<16x32xf32>
    %c0_3 = arith.constant 0 : index
    %c0_4 = arith.constant 0 : index
    %2 = vector.load %arg3[%c0_3, %c0_4] : memref<1x32xf32, #tpu.memory_space<vmem>>, vector<1x32xf32>
    %cst = arith.constant 1.000000e+00 : f32
    %3 = vector.broadcast %cst : f32 to vector<1x8xf32>
    %cst_5 = arith.constant dense<0.000000e+00> : vector<1x16xf32>
    %4 = tpu.matmul %3, %0, %cst_5 {dimension_numbers = #tpu.dot_dimension_numbers<[1], [0], [0], [1], [0, 0, 1, 1], [], []>} : vector<1x8xf32>, vector<8x16xf32>, vector<1x16xf32> -> vector<1x16xf32>
    %cst_6 = arith.constant 1.250000e-01 : f32
    %5 = vector.broadcast %cst_6 : f32 to vector<1x16xf32>
    %6 = arith.mulf %4, %5 : vector<1x16xf32>
    %7 = vector.broadcast %6 : vector<1x16xf32> to vector<8x16xf32>
    %8 = arith.subf %0, %7 : vector<8x16xf32>
    %9 = arith.mulf %8, %8 : vector<8x16xf32>
    %cst_7 = arith.constant dense<0.000000e+00> : vector<1x16xf32>
    %10 = tpu.matmul %3, %9, %cst_7 {dimension_numbers = #tpu.dot_dimension_numbers<[1], [0], [0], [1], [0, 0, 1, 1], [], []>} : vector<1x8xf32>, vector<8x16xf32>, vector<1x16xf32> -> vector<1x16xf32>
    %cst_8 = arith.constant 1.250000e-01 : f32
    %11 = vector.broadcast %cst_8 : f32 to vector<1x16xf32>
    %12 = arith.mulf %10, %11 : vector<1x16xf32>
    %cst_9 = arith.constant 9.99999974E-6 : f32
    %13 = vector.broadcast %cst_9 : f32 to vector<1x16xf32>
    %14 = arith.addf %12, %13 : vector<1x16xf32>
    %15 = math.rsqrt %14 : vector<1x16xf32>
    %16 = vector.broadcast %15 : vector<1x16xf32> to vector<8x16xf32>
    %17 = arith.mulf %8, %16 : vector<8x16xf32>
    %cst_10 = arith.constant dense<0.000000e+00> : vector<8x32xf32>
    %18 = tpu.matmul %17, %1, %cst_10 {dimension_numbers = #tpu.dot_dimension_numbers<[1], [0], [0], [1], [0, 0, 1, 1], [], []>} : vector<8x16xf32>, vector<16x32xf32>, vector<8x32xf32> -> vector<8x32xf32>
    %19 = vector.broadcast %2 : vector<1x32xf32> to vector<8x32xf32>
    %20 = arith.addf %18, %19 : vector<8x32xf32>
    %cst_11 = arith.constant 0.000000e+00 : f32
    %21 = vector.broadcast %cst_11 : f32 to vector<8x32xf32>
    %22 = arith.maximumf %20, %21 : vector<8x32xf32>
    %c0_12 = arith.constant 0 : index
    %c0_13 = arith.constant 0 : index
    %23 = vector.load %arg4[%c0_12, %c0_13] : memref<32x64xf32, #tpu.memory_space<vmem>>, vector<32x64xf32>
    %c0_14 = arith.constant 0 : index
    %c0_15 = arith.constant 0 : index
    %24 = vector.load %arg5[%c0_14, %c0_15] : memref<1x64xf32, #tpu.memory_space<vmem>>, vector<1x64xf32>
    %cst_16 = arith.constant 1.000000e+00 : f32
    %25 = vector.broadcast %cst_16 : f32 to vector<1x8xf32>
    %cst_17 = arith.constant dense<0.000000e+00> : vector<1x32xf32>
    %26 = tpu.matmul %25, %22, %cst_17 {dimension_numbers = #tpu.dot_dimension_numbers<[1], [0], [0], [1], [0, 0, 1, 1], [], []>} : vector<1x8xf32>, vector<8x32xf32>, vector<1x32xf32> -> vector<1x32xf32>
    %cst_18 = arith.constant 1.250000e-01 : f32
    %27 = vector.broadcast %cst_18 : f32 to vector<1x32xf32>
    %28 = arith.mulf %26, %27 : vector<1x32xf32>
    %29 = vector.broadcast %28 : vector<1x32xf32> to vector<8x32xf32>
    %30 = arith.subf %22, %29 : vector<8x32xf32>
    %31 = arith.mulf %30, %30 : vector<8x32xf32>
    %cst_19 = arith.constant dense<0.000000e+00> : vector<1x32xf32>
    %32 = tpu.matmul %25, %31, %cst_19 {dimension_numbers = #tpu.dot_dimension_numbers<[1], [0], [0], [1], [0, 0, 1, 1], [], []>} : vector<1x8xf32>, vector<8x32xf32>, vector<1x32xf32> -> vector<1x32xf32>
    %cst_20 = arith.constant 1.250000e-01 : f32
    %33 = vector.broadcast %cst_20 : f32 to vector<1x32xf32>
    %34 = arith.mulf %32, %33 : vector<1x32xf32>
    %cst_21 = arith.constant 9.99999974E-6 : f32
    %35 = vector.broadcast %cst_21 : f32 to vector<1x32xf32>
    %36 = arith.addf %34, %35 : vector<1x32xf32>
    %37 = math.rsqrt %36 : vector<1x32xf32>
    %38 = vector.broadcast %37 : vector<1x32xf32> to vector<8x32xf32>
    %39 = arith.mulf %30, %38 : vector<8x32xf32>
    %cst_22 = arith.constant dense<0.000000e+00> : vector<8x64xf32>
    %40 = tpu.matmul %39, %23, %cst_22 {dimension_numbers = #tpu.dot_dimension_numbers<[1], [0], [0], [1], [0, 0, 1, 1], [], []>} : vector<8x32xf32>, vector<32x64xf32>, vector<8x64xf32> -> vector<8x64xf32>
    %41 = vector.broadcast %24 : vector<1x64xf32> to vector<8x64xf32>
    %42 = arith.addf %40, %41 : vector<8x64xf32>
    %cst_23 = arith.constant 0.000000e+00 : f32
    %43 = vector.broadcast %cst_23 : f32 to vector<8x64xf32>
    %44 = arith.maximumf %42, %43 : vector<8x64xf32>
    %c0_24 = arith.constant 0 : index
    %c0_25 = arith.constant 0 : index
    %45 = vector.load %arg6[%c0_24, %c0_25] : memref<64x128xf32, #tpu.memory_space<vmem>>, vector<64x128xf32>
    %c0_26 = arith.constant 0 : index
    %c0_27 = arith.constant 0 : index
    %46 = vector.load %arg7[%c0_26, %c0_27] : memref<1x128xf32, #tpu.memory_space<vmem>>, vector<1x128xf32>
    %cst_28 = arith.constant 1.000000e+00 : f32
    %47 = vector.broadcast %cst_28 : f32 to vector<1x8xf32>
    %cst_29 = arith.constant dense<0.000000e+00> : vector<1x64xf32>
    %48 = tpu.matmul %47, %44, %cst_29 {dimension_numbers = #tpu.dot_dimension_numbers<[1], [0], [0], [1], [0, 0, 1, 1], [], []>} : vector<1x8xf32>, vector<8x64xf32>, vector<1x64xf32> -> vector<1x64xf32>
    %cst_30 = arith.constant 1.250000e-01 : f32
    %49 = vector.broadcast %cst_30 : f32 to vector<1x64xf32>
    %50 = arith.mulf %48, %49 : vector<1x64xf32>
    %51 = vector.broadcast %50 : vector<1x64xf32> to vector<8x64xf32>
    %52 = arith.subf %44, %51 : vector<8x64xf32>
    %53 = arith.mulf %52, %52 : vector<8x64xf32>
    %cst_31 = arith.constant dense<0.000000e+00> : vector<1x64xf32>
    %54 = tpu.matmul %47, %53, %cst_31 {dimension_numbers = #tpu.dot_dimension_numbers<[1], [0], [0], [1], [0, 0, 1, 1], [], []>} : vector<1x8xf32>, vector<8x64xf32>, vector<1x64xf32> -> vector<1x64xf32>
    %cst_32 = arith.constant 1.250000e-01 : f32
    %55 = vector.broadcast %cst_32 : f32 to vector<1x64xf32>
    %56 = arith.mulf %54, %55 : vector<1x64xf32>
    %cst_33 = arith.constant 9.99999974E-6 : f32
    %57 = vector.broadcast %cst_33 : f32 to vector<1x64xf32>
    %58 = arith.addf %56, %57 : vector<1x64xf32>
    %59 = math.rsqrt %58 : vector<1x64xf32>
    %60 = vector.broadcast %59 : vector<1x64xf32> to vector<8x64xf32>
    %61 = arith.mulf %52, %60 : vector<8x64xf32>
    %cst_34 = arith.constant dense<0.000000e+00> : vector<8x128xf32>
    %62 = tpu.matmul %61, %45, %cst_34 {dimension_numbers = #tpu.dot_dimension_numbers<[1], [0], [0], [1], [0, 0, 1, 1], [], []>} : vector<8x64xf32>, vector<64x128xf32>, vector<8x128xf32> -> vector<8x128xf32>
    %63 = vector.broadcast %46 : vector<1x128xf32> to vector<8x128xf32>
    %64 = arith.addf %62, %63 : vector<8x128xf32>
    %c0_35 = arith.constant 0 : index
    %c0_36 = arith.constant 0 : index
    %65 = vector.load %arg8[%c0_35, %c0_36] : memref<8x128xf32, #tpu.memory_space<vmem>>, vector<8x128xf32>
    tpu.vector_store %arg8[%c0_35, %c0_36], %64 {strides = array<i32>} : memref<8x128xf32, #tpu.memory_space<vmem>>, vector<8x128xf32>,
    return
  }
  func.func @transform_0(%arg0: i32) -> (i32, i32) {
    %c0_i32 = arith.constant 0 : i32
    %c0_i32_0 = arith.constant 0 : i32
    return %arg0, %c0_i32 : i32, i32
  }
  func.func @transform_1(%arg0: i32) -> (i32, i32) {
    %c0_i32 = arith.constant 0 : i32
    %c0_i32_0 = arith.constant 0 : i32
    %c0_i32_1 = arith.constant 0 : i32
    return %c0_i32, %c0_i32_0 : i32, i32
  }
  func.func @transform_2(%arg0: i32) -> (i32, i32) {
    %c0_i32 = arith.constant 0 : i32
    %c0_i32_0 = arith.constant 0 : i32
    %c0_i32_1 = arith.constant 0 : i32
    return %c0_i32, %c0_i32_0 : i32, i32
  }
  func.func @transform_3(%arg0: i32) -> (i32, i32) {
    %c0_i32 = arith.constant 0 : i32
    %c0_i32_0 = arith.constant 0 : i32
    %c0_i32_1 = arith.constant 0 : i32
    return %c0_i32, %c0_i32_0 : i32, i32
  }
  func.func @transform_4(%arg0: i32) -> (i32, i32) {
    %c0_i32 = arith.constant 0 : i32
    %c0_i32_0 = arith.constant 0 : i32
    %c0_i32_1 = arith.constant 0 : i32
    return %c0_i32, %c0_i32_0 : i32, i32
  }
  func.func @transform_5(%arg0: i32) -> (i32, i32) {
    %c0_i32 = arith.constant 0 : i32
    %c0_i32_0 = arith.constant 0 : i32
    %c0_i32_1 = arith.constant 0 : i32
    return %c0_i32, %c0_i32_0 : i32, i32
  }
  func.func @transform_6(%arg0: i32) -> (i32, i32) {
    %c0_i32 = arith.constant 0 : i32
    %c0_i32_0 = arith.constant 0 : i32
    %c0_i32_1 = arith.constant 0 : i32
    return %c0_i32, %c0_i32_0 : i32, i32
  }
  func.func @transform_7(%arg0: i32) -> (i32, i32) {
    %c0_i32 = arith.constant 0 : i32
    %c0_i32_0 = arith.constant 0 : i32
    return %arg0, %c0_i32 : i32, i32
  }
}

module attributes {stable_mosaic.version = 11 : i64} {
  func.func @_fused_mlp_kernel(%arg0: i32, %arg1: memref<8x16xf32, #tpu.memory_space<vmem>>, %arg2: memref<16x32xf32, #tpu.memory_space<vmem>>, %arg3: memref<1x32xf32, #tpu.memory_space<vmem>>, %arg4: memref<32x64xf32, #tpu.memory_space<vmem>>, %arg5: memref<1x64xf32, #tpu.memory_space<vmem>>, %arg6: memref<64x128xf32, #tpu.memory_space<vmem>>, %arg7: memref<1x128xf32, #tpu.memory_space<vmem>>, %arg8: memref<8x128xf32, #tpu.memory_space<vmem>>) attributes {dimension_semantics = [#tpu.dimension_semantics<arbitrary>], iteration_bounds = array<i64: 1>, scalar_prefetch = 0 : i64, scratch_operands = 0 : i64, tpu.core_type = #tpu.core_type<tc>, window_params = [{transform_indices = @transform_0, window_bounds = array<i64: 8, 16>}, {pipeline_mode = #tpu.pipeline_mode<synchronous>, transform_indices = @transform_1, window_bounds = array<i64: 16, 32>}, {pipeline_mode = #tpu.pipeline_mode<synchronous>, transform_indices = @transform_2, window_bounds = array<i64: 1, 32>}, {pipeline_mode = #tpu.pipeline_mode<synchronous>, transform_indices = @transform_3, window_bounds = array<i64: 32, 64>}, {pipeline_mode = #tpu.pipeline_mode<synchronous>, transform_indices = @transform_4, window_bounds = array<i64: 1, 64>}, {pipeline_mode = #tpu.pipeline_mode<synchronous>, transform_indices = @transform_5, window_bounds = array<i64: 64, 128>}, {pipeline_mode = #tpu.pipeline_mode<synchronous>, transform_indices = @transform_6, window_bounds = array<i64: 1, 128>}, {transform_indices = @transform_7, window_bounds = array<i64: 8, 128>}]} {
    %c0 = arith.constant 0 : index
    %c0_0 = arith.constant 0 : index
    %0 = vector.load %arg1[%c0, %c0_0] : memref<8x16xf32, #tpu.memory_space<vmem>>, vector<8x16xf32>
    %c0_1 = arith.constant 0 : index
    %c0_2 = arith.constant 0 : index
    %1 = vector.load %arg2[%c0_1, %c0_2] : memref<16x32xf32, #tpu.memory_space<vmem>>, vector<16x32xf32>
    %c0_3 = arith.constant 0 : index
    %c0_4 = arith.constant 0 : index
    %2 = vector.load %arg3[%c0_3, %c0_4] : memref<1x32xf32, #tpu.memory_space<vmem>>, vector<1x32xf32>
    %cst = arith.constant 1.000000e+00 : f32
    %3 = vector.broadcast %cst : f32 to vector<1x8xf32>
    %cst_5 = arith.constant dense<0.000000e+00> : vector<1x16xf32>
    %4 = tpu.matmul %3, %0, %cst_5 {dimension_numbers = #tpu.dot_dimension_numbers<[1], [0], [0], [1], [0, 0, 1, 1], [], []>} : vector<1x8xf32>, vector<8x16xf32>, vector<1x16xf32> -> vector<1x16xf32>
    %cst_6 = arith.constant 1.250000e-01 : f32
    %5 = vector.broadcast %cst_6 : f32 to vector<1x16xf32>
    %6 = arith.mulf %4, %5 : vector<1x16xf32>
    %7 = vector.broadcast %6 : vector<1x16xf32> to vector<8x16xf32>
    %8 = arith.subf %0, %7 : vector<8x16xf32>
    %9 = arith.mulf %8, %8 : vector<8x16xf32>
    %cst_7 = arith.constant dense<0.000000e+00> : vector<1x16xf32>
    %10 = tpu.matmul %3, %9, %cst_7 {dimension_numbers = #tpu.dot_dimension_numbers<[1], [0], [0], [1], [0, 0, 1, 1], [], []>} : vector<1x8xf32>, vector<8x16xf32>, vector<1x16xf32> -> vector<1x16xf32>
    %cst_8 = arith.constant 1.250000e-01 : f32
    %11 = vector.broadcast %cst_8 : f32 to vector<1x16xf32>
    %12 = arith.mulf %10, %11 : vector<1x16xf32>
    %cst_9 = arith.constant 9.99999974E-6 : f32
    %13 = vector.broadcast %cst_9 : f32 to vector<1x16xf32>
    %14 = arith.addf %12, %13 : vector<1x16xf32>
    %15 = math.rsqrt %14 : vector<1x16xf32>
    %16 = vector.broadcast %15 : vector<1x16xf32> to vector<8x16xf32>
    %17 = arith.mulf %8, %16 : vector<8x16xf32>
    %cst_10 = arith.constant dense<0.000000e+00> : vector<8x32xf32>
    %18 = tpu.matmul %17, %1, %cst_10 {dimension_numbers = #tpu.dot_dimension_numbers<[1], [0], [0], [1], [0, 0, 1, 1], [], []>} : vector<8x16xf32>, vector<16x32xf32>, vector<8x32xf32> -> vector<8x32xf32>
    %19 = vector.broadcast %2 : vector<1x32xf32> to vector<8x32xf32>
    %20 = arith.addf %18, %19 : vector<8x32xf32>
    %cst_11 = arith.constant 0.000000e+00 : f32
    %21 = vector.broadcast %cst_11 : f32 to vector<8x32xf32>
    %22 = arith.maximumf %20, %21 : vector<8x32xf32>
    %c0_12 = arith.constant 0 : index
    %c0_13 = arith.constant 0 : index
    %23 = vector.load %arg4[%c0_12, %c0_13] : memref<32x64xf32, #tpu.memory_space<vmem>>, vector<32x64xf32>
    %c0_14 = arith.constant 0 : index
    %c0_15 = arith.constant 0 : index
    %24 = vector.load %arg5[%c0_14, %c0_15] : memref<1x64xf32, #tpu.memory_space<vmem>>, vector<1x64xf32>
    %cst_16 = arith.constant 1.000000e+00 : f32
    %25 = vector.broadcast %cst_16 : f32 to vector<1x8xf32>
    %cst_17 = arith.constant dense<0.000000e+00> : vector<1x32xf32>
    %26 = tpu.matmul %25, %22, %cst_17 {dimension_numbers = #tpu.dot_dimension_numbers<[1], [0], [0], [1], [0, 0, 1, 1], [], []>} : vector<1x8xf32>, vector<8x32xf32>, vector<1x32xf32> -> vector<1x32xf32>
    %cst_18 = arith.constant 1.250000e-01 : f32
    %27 = vector.broadcast %cst_18 : f32 to vector<1x32xf32>
    %28 = arith.mulf %26, %27 : vector<1x32xf32>
    %29 = vector.broadcast %28 : vector<1x32xf32> to vector<8x32xf32>
    %30 = arith.subf %22, %29 : vector<8x32xf32>
    %31 = arith.mulf %30, %30 : vector<8x32xf32>
    %cst_19 = arith.constant dense<0.000000e+00> : vector<1x32xf32>
    %32 = tpu.matmul %25, %31, %cst_19 {dimension_numbers = #tpu.dot_dimension_numbers<[1], [0], [0], [1], [0, 0, 1, 1], [], []>} : vector<1x8xf32>, vector<8x32xf32>, vector<1x32xf32> -> vector<1x32xf32>
    %cst_20 = arith.constant 1.250000e-01 : f32
    %33 = vector.broadcast %cst_20 : f32 to vector<1x32xf32>
    %34 = arith.mulf %32, %33 : vector<1x32xf32>
    %cst_21 = arith.constant 9.99999974E-6 : f32
    %35 = vector.broadcast %cst_21 : f32 to vector<1x32xf32>
    %36 = arith.addf %34, %35 : vector<1x32xf32>
    %37 = math.rsqrt %36 : vector<1x32xf32>
    %38 = vector.broadcast %37 : vector<1x32xf32> to vector<8x32xf32>
    %39 = arith.mulf %30, %38 : vector<8x32xf32>
    %cst_22 = arith.constant dense<0.000000e+00> : vector<8x64xf32>
    %40 = tpu.matmul %39, %23, %cst_22 {dimension_numbers = #tpu.dot_dimension_numbers<[1], [0], [0], [1], [0, 0, 1, 1], [], []>} : vector<8x32xf32>, vector<32x64xf32>, vector<8x64xf32> -> vector<8x64xf32>
    %41 = vector.broadcast %24 : vector<1x64xf32> to vector<8x64xf32>
    %42 = arith.addf %40, %41 : vector<8x64xf32>
    %cst_23 = arith.constant 0.000000e+00 : f32
    %43 = vector.broadcast %cst_23 : f32 to vector<8x64xf32>
    %44 = arith.maximumf %42, %43 : vector<8x64xf32>
    %c0_24 = arith.constant 0 : index
    %c0_25 = arith.constant 0 : index
    %45 = vector.load %arg6[%c0_24, %c0_25] : memref<64x128xf32, #tpu.memory_space<vmem>>, vector<64x128xf32>
    %c0_26 = arith.constant 0 : index
    %c0_27 = arith.constant 0 : index
    %46 = vector.load %arg7[%c0_26, %c0_27] : memref<1x128xf32, #tpu.memory_space<vmem>>, vector<1x128xf32>
    %cst_28 = arith.constant 1.000000e+00 : f32
    %47 = vector.broadcast %cst_28 : f32 to vector<1x8xf32>
    %cst_29 = arith.constant dense<0.000000e+00> : vector<1x64xf32>
    %48 = tpu.matmul %47, %44, %cst_29 {dimension_numbers = #tpu.dot_dimension_numbers<[1], [0], [0], [1], [0, 0, 1, 1], [], []>} : vector<1x8xf32>, vector<8x64xf32>, vector<1x64xf32> -> vector<1x64xf32>
    %cst_30 = arith.constant 1.250000e-01 : f32
    %49 = vector.broadcast %cst_30 : f32 to vector<1x64xf32>
    %50 = arith.mulf %48, %49 : vector<1x64xf32>
    %51 = vector.broadcast %50 : vector<1x64xf32> to vector<8x64xf32>
    %52 = arith.subf %44, %51 : vector<8x64xf32>
    %53 = arith.mulf %52, %52 : vector<8x64xf32>
    %cst_31 = arith.constant dense<0.000000e+00> : vector<1x64xf32>
    %54 = tpu.matmul %47, %53, %cst_31 {dimension_numbers = #tpu.dot_dimension_numbers<[1], [0], [0], [1], [0, 0, 1, 1], [], []>} : vector<1x8xf32>, vector<8x64xf32>, vector<1x64xf32> -> vector<1x64xf32>
    %cst_32 = arith.constant 1.250000e-01 : f32
    %55 = vector.broadcast %cst_32 : f32 to vector<1x64xf32>
    %56 = arith.mulf %54, %55 : vector<1x64xf32>
    %cst_33 = arith.constant 9.99999974E-6 : f32
    %57 = vector.broadcast %cst_33 : f32 to vector<1x64xf32>
    %58 = arith.addf %56, %57 : vector<1x64xf32>
    %59 = math.rsqrt %58 : vector<1x64xf32>
    %60 = vector.broadcast %59 : vector<1x64xf32> to vector<8x64xf32>
    %61 = arith.mulf %52, %60 : vector<8x64xf32>
    %cst_34 = arith.constant dense<0.000000e+00> : vector<8x128xf32>
    %62 = tpu.matmul %61, %45, %cst_34 {dimension_numbers = #tpu.dot_dimension_numbers<[1], [0], [0], [1], [0, 0, 1, 1], [], []>} : vector<8x64xf32>, vector<64x128xf32>, vector<8x128xf32> -> vector<8x128xf32>
    %63 = vector.broadcast %46 : vector<1x128xf32> to vector<8x128xf32>
    %64 = arith.addf %62, %63 : vector<8x128xf32>
    %c0_35 = arith.constant 0 : index
    %c0_36 = arith.constant 0 : index
    %65 = vector.load %arg8[%c0_35, %c0_36] : memref<8x128xf32, #tpu.memory_space<vmem>>, vector<8x128xf32>
    tpu.vector_store %arg8[%c0_35, %c0_36], %64 {strides = array<i32>} : memref<8x128xf32, #tpu.memory_space<vmem>>, vector<8x128xf32>,
    return
  }
  func.func @transform_0(%arg0: i32) -> (i32, i32) {
    %c0_i32 = arith.constant 0 : i32
    %c0_i32_0 = arith.constant 0 : i32
    return %arg0, %c0_i32 : i32, i32
  }
  func.func @transform_1(%arg0: i32) -> (i32, i32) {
    %c0_i32 = arith.constant 0 : i32
    %c0_i32_0 = arith.constant 0 : i32
    %c0_i32_1 = arith.constant 0 : i32
    return %c0_i32, %c0_i32_0 : i32, i32
  }
  func.func @transform_2(%arg0: i32) -> (i32, i32) {
    %c0_i32 = arith.constant 0 : i32
    %c0_i32_0 = arith.constant 0 : i32
    %c0_i32_1 = arith.constant 0 : i32
    return %c0_i32, %c0_i32_0 : i32, i32
  }
  func.func @transform_3(%arg0: i32) -> (i32, i32) {
    %c0_i32 = arith.constant 0 : i32
    %c0_i32_0 = arith.constant 0 : i32
    %c0_i32_1 = arith.constant 0 : i32
    return %c0_i32, %c0_i32_0 : i32, i32
  }
  func.func @transform_4(%arg0: i32) -> (i32, i32) {
    %c0_i32 = arith.constant 0 : i32
    %c0_i32_0 = arith.constant 0 : i32
    %c0_i32_1 = arith.constant 0 : i32
    return %c0_i32, %c0_i32_0 : i32, i32
  }
  func.func @transform_5(%arg0: i32) -> (i32, i32) {
    %c0_i32 = arith.constant 0 : i32
    %c0_i32_0 = arith.constant 0 : i32
    %c0_i32_1 = arith.constant 0 : i32
    return %c0_i32, %c0_i32_0 : i32, i32
  }
  func.func @transform_6(%arg0: i32) -> (i32, i32) {
    %c0_i32 = arith.constant 0 : i32
    %c0_i32_0 = arith.constant 0 : i32
    %c0_i32_1 = arith.constant 0 : i32
    return %c0_i32, %c0_i32_0 : i32, i32
  }
  func.func @transform_7(%arg0: i32) -> (i32, i32) {
    %c0_i32 = arith.constant 0 : i32
    %c0_i32_0 = arith.constant 0 : i32
    return %arg0, %c0_i32 : i32, i32
  }
}

</mosaic_0001>

<bundles_post_ra>
// kernel: tpu_custom_call.1
= control target key start
LH: loop header
LB: loop body
LE: loop exit
PB: predicated region body
PF: predicated region fallthrough
CT: control target
= control target key end

     0   :  { %12 = vsyncpa [#allocation3], 0  ;;  %s1271_s0 = inlined_call_operand.hbm [shape: f32[8,16], index: 0, kind: input, shape index: {}]   ;;  %s1272_s1 = inlined_call_operand.hbm [shape: f32[16,32], index: 1, kind: input, shape index: {}]   ;;  %s1273_s2 = inlined_call_operand.vmem [shape: f32[1,32], index: 2, kind: input, shape index: {}]   ;;  %s1274_s3 = inlined_call_operand.hbm [shape: f32[32,64], index: 3, kind: input, shape index: {}]   ;;  %s1275_s4 = inlined_call_operand.vmem [shape: f32[1,64], index: 4, kind: input, shape index: {}]   ;;  %s1276_s5 = inlined_call_operand.hbm [shape: f32[64,128], index: 5, kind: input, shape index: {}]   ;;  %s1277_s6 = inlined_call_operand.vmem [shape: f32[1,128], index: 6, kind: input, shape index: {}]   ;;  %s1278_s7 = inlined_call_operand.hbm [shape: f32[8,128], index: 7, kind: output, shape index: {}]  }
   0x1   :  { %13 = vsyncpa [#allocation6], 0 }
   0x2   :  { %14 = vsyncpa [#allocation9], 0 }
   0x3   :  { %15 = vsyncpa [#allocation4], 0  ;;  %s1091_s24 = smov [#allocation5]   ;;  %s973_s28 = scalar_lea.hbm %s1272_s1, 256 }
   0x4   :  { %s31_s25 = sshll.u32 %s1091_s24, 4  ;;  %p974_p0 = scmp.ne.s32.totalorder %s1272_s1, %s973_s28  ;;  %s32_s25 = int_to_ptr.vmem [resolvable:$true] %s31_s25 }
   0x5   :  { %p977_p1 = scmp.lt.u32.totalorder %s973_s28, %s1272_s1 }
   0x7   :  { %p979_p2 = pnand %p977_p1, %p974_p0 }
   0x9   :  { %982 = shalt.err (!%p979_p2)
}
   0xa   :  { %s983_s10 = scalar_lea.vmem %s32_s25, 256  ;;  %p988_p4 = scmp.lt.s32.totalorder %s32_s25, %s32_s25 }
   0xb   :  { %p984_p3 = scmp.ne.s32.totalorder %s32_s25, %s983_s10  ;;  %p989_p5 = scmp.lt.s32.totalorder %s983_s10, %s983_s10 }
   0xd   :  { %p990_p6 = por %p989_p5, %p988_p4 }
   0xf   :  { %p991_p7 = pnand %p990_p6, %p984_p3 }
  0x11   :  { %994 = shalt.err (!%p991_p7)
}
  0x12   :  { %s1092_s11 = smov 128   ;;  %s1093_s12 = smov 8  }
  0x13   :  { %37 = dma.hbm_to_vmem [thread:$0]  %s1272_s1, 256, %s32_s25, [#allocation6], %s1092_s11, %s1092_s11, %s1093_s12  }
  0x14   :  { %s1094_s15 = smov [#allocation2]   ;;  %s1095_s17 = smov [#allocation7]  }
  0x15   :  { %s22_s16 = sshll.u32 %s1094_s15, 4  ;;  %s45_s18 = sshll.u32 %s1095_s17, 4  ;;  %s23_s16 = int_to_ptr.vmem [resolvable:$true] %s22_s16  ;;  %s46_s18 = int_to_ptr.vmem [resolvable:$true] %s45_s18 }
  0x16   :  { %s995_s21 = scalar_lea.hbm %s1271_s0, 128 }
  0x17   :  { %p996_p8 = scmp.ne.s32.totalorder %s1271_s0, %s995_s21  ;;  %p999_p9 = scmp.lt.u32.totalorder %s995_s21, %s1271_s0 }
  0x19   :  { %p1001_p10 = pnand %p999_p9, %p996_p8 }
  0x1b   :  { %1004 = shalt.err (!%p1001_p10)
}
  0x1c   :  { %s1005_s1 = scalar_lea.vmem %s23_s16, 128  ;;  %p1010_p12 = scmp.lt.s32.totalorder %s23_s16, %s23_s16 }
  0x1d   :  { %p1006_p11 = scmp.ne.s32.totalorder %s23_s16, %s1005_s1  ;;  %p1011_p13 = scmp.lt.s32.totalorder %s1005_s1, %s1005_s1 }
  0x1f   :  { %p1012_p0 = por %p1011_p13, %p1010_p12 }
  0x21   :  { %p1013_p1 = pnand %p1012_p0, %p1006_p11 }
  0x23   :  { %1016 = shalt.err (!%p1013_p1)
}
  0x24   :  { %25 = dma.hbm_to_vmem [thread:$0]  %s1271_s0, 128, %s23_s16, [#allocation3]  }
  0x25   :  { %s1017_s30 = scalar_lea.hbm %s1274_s3, 512 }
  0x26   :  { %p1018_p2 = scmp.ne.s32.totalorder %s1274_s3, %s1017_s30  ;;  %p1021_p3 = scmp.lt.u32.totalorder %s1017_s30, %s1274_s3 }
  0x28   :  { %p1023_p4 = pnand %p1021_p3, %p1018_p2 }
  0x2a   :  { %1026 = shalt.err (!%p1023_p4)
}
  0x2b   :  { %s1027_s14 = scalar_lea.vmem %s46_s18, 512  ;;  %p1032_p6 = scmp.lt.s32.totalorder %s46_s18, %s46_s18 }
  0x2c   :  { %p1028_p5 = scmp.ne.s32.totalorder %s46_s18, %s1027_s14  ;;  %p1033_p7 = scmp.lt.s32.totalorder %s1027_s14, %s1027_s14 }
  0x2e   :  { %p1034_p8 = por %p1033_p7, %p1032_p6 }
  0x30   :  { %p1035_p9 = pnand %p1034_p8, %p1028_p5 }
  0x32   :  { %1038 = shalt.err (!%p1035_p9)
}
  0x33   :  { %51 = dma.hbm_to_vmem [thread:$0]  %s1274_s3, 512, %s46_s18, [#allocation6], %s1092_s11, %s1092_s11, %s1093_s12  }
  0x34   :  { %s1096_s16 = smov [#allocation8]   ;;  %s1039_s21 = scalar_lea.hbm %s1276_s5, 1024 }
  0x35   :  { %s59_s17 = sshll.u32 %s1096_s16, 4  ;;  %p1040_p10 = scmp.ne.s32.totalorder %s1276_s5, %s1039_s21  ;;  %s60_s17 = int_to_ptr.vmem [resolvable:$true] %s59_s17 }
  0x36   :  { %p1043_p11 = scmp.lt.u32.totalorder %s1039_s21, %s1276_s5 }
  0x38   :  { %p1045_p12 = pnand %p1043_p11, %p1040_p10 }
  0x3a   :  { %1048 = shalt.err (!%p1045_p12)
}
  0x3b   :  { %s1049_s1 = scalar_lea.vmem %s60_s17, 1024  ;;  %p1054_p0 = scmp.lt.s32.totalorder %s60_s17, %s60_s17 }
  0x3c   :  { %p1050_p13 = scmp.ne.s32.totalorder %s60_s17, %s1049_s1  ;;  %p1055_p1 = scmp.lt.s32.totalorder %s1049_s1, %s1049_s1 }
  0x3e   :  { %p1056_p2 = por %p1055_p1, %p1054_p0 }
  0x40   :  { %p1057_p3 = pnand %p1056_p2, %p1050_p13 }
  0x42   :  { %1060 = shalt.err (!%p1057_p3)
}
  0x43   :  { %65 = dma.hbm_to_vmem [thread:$0]  %s1276_s5, 1024, %s60_s17, [#allocation9], %s1092_s11, %s1092_s11, %s1093_s12  }
  0x44   :  { %1083 = dma.done.wait [#allocation3], 128  }
  0x45   :  { %1084 = vsyncadd [#allocation3], 4294967168 }
  0x46   :  { %1085 = dma.done.wait [#allocation6], 768  }
  0x47   :  { %1086 = vsyncadd [#allocation6], 4294966528 }
  0x48   :  { %1087 = dma.done.wait [#allocation9], 1024  }
  0x49   :  { %1088 = vsyncadd [#allocation9], 4294966272  ;;  %v1097_v0 = vmov 0.0   ;;  %vm1098_vm0 = vmmov 0   ;;  %vm84_vm1 = vcmask 64512   ;;  %v80_v1 = vld [vmem:[#allocation2] sm:$0xff]  ;;  %v159_v3 = vlaneseq }
  0x4a   :  { %868 = vmatprep.subr.mxu0 %v1097_v0  ;;  %870 = vmatprep.mubr.msk.f32.mxu0 %vm1098_vm0, %v1097_v0  ;;  %v1099_v2 = vmov 1.0   ;;  %v81_v12 = vld [vmem:[#allocation5] sm:$0xff]  ;;  %v82_v13 = vld [vmem:[#allocation5 + $0x8] sm:$0xff]  ;;  %v1100_v15 = vmov 0.0|0.0   ;;  %vm249_vm2 = vcmask 130048   ;;  %v324_v34 = vld [vmem:[#allocation7] sm:$0xff] }
  0x4b   :  { %885 = vmatprep.subr.mxu1 %v1097_v0  ;;  %887 = vmatprep.mubr.msk.f32.mxu1 %vm1098_vm0, %v1097_v0  ;;  %v160_v4 = vshrl.u32 %v159_v3, 7  ;;  %v936_v14 = vpack.c.bf16 %v82_v13, %v81_v12  ;;  %v829_v23 = vld [vmem:[%s1273_s2] ss:$0 sm:$0xff]  ;;  %v326_v37 = vld [vmem:[#allocation7 + $0x10] sm:$0xff]  ;;  %v327_v38 = vld [vmem:[#allocation7 + $0x18] sm:$0xff]  ;;  %vm490_vm3 = vcmask 261120  }
  0x4c   :  { %869 = vmatpush3.msra.mxu0 %v80_v1  ;;  %v325_v35 = vld [vmem:[#allocation7 + $0x8] sm:$0xff]  ;;  %v942_v39 = vpack.c.bf16 %v327_v38, %v326_v37  ;;  %v565_v58 = vld [vmem:[#allocation8] sm:$0xff]  ;;  %v567_v61 = vld [vmem:[#allocation8 + $0x10] sm:$0xff]  ;;  %vm735_vm4 = vcmask 523264   ;;  %s1101_s27 = smov [#allocation10]  }
  0x4d   :  { %871 = vmatmul.mubr.msk.f32.vlgmr.msra.gmra.mrb[0].mxu0 %vm84_vm1, %v1099_v2  ;;  %873 = vmatprep.subr.mxu0 %v1097_v0  ;;  %v1210_v5 = vsub.s32 0, %v160_v4  ;;  %v939_v36 = vpack.c.bf16 %v325_v35, %v324_v34  ;;  %v833_v47 = vld [vmem:[%s1275_s4] ss:$0 sm:$0xff]  ;;  %v568_v62 = vld [vmem:[#allocation8 + $0x18] sm:$0xff]  ;;  %v571_v4 = vld [vmem:[#allocation8 + $0x30] sm:$0xff]  ;;  %s816_s28 = sshll.u32 %s1101_s27, 4  ;;  %s817_s28 = int_to_ptr.vmem [resolvable:$true] %s816_s28 }
  0x4e   :  { %875 = vmatprep.mubr.msk.f32.mxu0 %vm1098_vm0, %v1097_v0  ;;  %v566_v59 = vld [vmem:[#allocation8 + $0x8] sm:$0xff]  ;;  %v948_v63 = vpack.c.bf16 %v568_v62, %v567_v61  ;;  %s1061_s29 = scalar_lea.vmem %s817_s28, 128  ;;  %p1066_p5 = scmp.lt.s32.totalorder %s817_s28, %s817_s28 }
  0x4f   :  { %v945_v60 = vpack.c.bf16 %v566_v59, %v565_v58  ;;  %p1062_p4 = scmp.ne.s32.totalorder %s817_s28, %s1061_s29  ;;  %p1067_p6 = scmp.lt.s32.totalorder %s1061_s29, %s1061_s29 }
  0x51   :  { %p1068_p7 = por %p1067_p6, %p1066_p5 }
  0x53   :  { %p1069_p8 = pnand %p1068_p7, %p1062_p4 }
 0x120   :  { %v154_v6 = vpop.f32.mrb[0].mxu0 }
 0x121   :  { %v158_v7 = vmul.f32 0.125, %v154_v6  ;;  %v872_v8 = vpop.f32.mrb[1].mxu0 }
 0x123   :  { %v162_v9 = vrot.slane %v158_v7, %v1210_v5 }
 0x125   :  { %v163_v10 = vsub.f32 %v80_v1, %v162_v9  ;;  %v570_v1 = vld [vmem:[#allocation8 + $0x28] sm:$0xff] }
 0x127   :  { %v164_v11 = vmul.f32 %v163_v10, %v163_v10 }
 0x129   :  { %874 = vmatpush3.msra.mxu0 %v164_v11 }
 0x12a   :  { %876 = vmatmul.mubr.msk.f32.vlgmr.msra.gmra.mrb[2].mxu0 %vm84_vm1, %v1099_v2  ;;  %935 = vmatprep.subr.bf16.mxu0 %v1100_v15 }
 0x12b   :  { %882 = vmatprep.mubr.msk.f32.mxu0 %vm1098_vm0, %v1097_v0  ;;  %937 = vmatpush3.bf16.msra.mxu0 %v936_v14  ;;  %v837_v14 = vld [vmem:[%s1277_s6] ss:$0 sm:$0xff] }
 0x12c   :  { %890 = vmatprep.subr.mxu0 %v1097_v0 }
 0x1fd   :  { %v231_v16 = vpop.f32.mrb[2].mxu0 }
 0x1fe   :  { %v235_v17 = vmul.f32 0.125, %v231_v16  ;;  %v877_v18 = vpop.f32.mrb[3].mxu0 }
 0x200   :  { %v236_v19 = vadd.f32 1e-05, %v235_v17 }
 0x202   :  { %967 = vrsqrt.f32 %v236_v19 }
 0x20c   :  { %v968_v20 = vpop.eup %967 }
 0x20d   :  { %v241_v21 = vrot.slane %v968_v20, %v1210_v5 }
 0x20f   :  { %v242_v22 = vmul.f32 %v241_v21, %v163_v10 }
 0x211   :  { %883 = vmatmul.mubr.msk.f32.vlgmr.msra.gmra.mrb[4].mxu0 %vm249_vm2, %v242_v22 }
 0x212   :  { %892 = vmatprep.mubr.msk.f32.mxu0 %vm1098_vm0, %v1097_v0 }
 0x2e4   :  { %v319_v24 = vpop.f32.mrb[4].mxu0 }
 0x2e5   :  { %v320_v25 = vadd.f32 %v829_v23, %v319_v24  ;;  %v884_v26 = vpop.f32.mrb[5].mxu0 }
 0x2e7   :  { %v323_v27 = vmax.f32 %v320_v25, 0.0 }
 0x2e9   :  { %886 = vmatpush3.msra.mxu1 %v323_v27 }
 0x2ea   :  { %888 = vmatmul.mubr.msk.f32.vlgmr.msra.gmra.mrb[0].mxu1 %vm84_vm1, %v1099_v2  ;;  %938 = vmatprep.subr.bf16.mxu1 %v1100_v15 }
 0x2eb   :  { %903 = vmatprep.mubr.msk.f32.mxu1 %vm1098_vm0, %v1097_v0  ;;  %940 = vmatpush3.bf16.msra.mxu1 %v939_v36 }
 0x2ec   :  { %941 = vmatprep.subr.bf16.mxu1 %v1100_v15 }
 0x2ef   :  { %943 = vmatpush3.bf16.msra.mxu1 %v942_v39 }
 0x2f0   :  { %944 = vmatprep.subr.bf16.mxu1 %v1100_v15 }
 0x3bd   :  { %v395_v28 = vpop.f32.mrb[0].mxu1 }
 0x3be   :  { %v399_v29 = vmul.f32 0.125, %v395_v28  ;;  %v889_v30 = vpop.f32.mrb[1].mxu1 }
 0x3c0   :  { %v403_v31 = vrot.slane %v399_v29, %v1210_v5 }
 0x3c2   :  { %v404_v32 = vsub.f32 %v323_v27, %v403_v31 }
 0x3c4   :  { %v405_v33 = vmul.f32 %v404_v32, %v404_v32 }
 0x3c6   :  { %891 = vmatpush3.msra.mxu0 %v405_v33 }
 0x3c7   :  { %893 = vmatmul.mubr.msk.f32.vlgmr.msra.gmra.mrb[6].mxu0 %vm84_vm1, %v1099_v2  ;;  %906 = vmatprep.subr.mxu0 %v1097_v0 }
 0x3c8   :  { %908 = vmatprep.mubr.msk.f32.mxu0 %vm1098_vm0, %v1097_v0 }
 0x49a   :  { %v472_v40 = vpop.f32.mrb[6].mxu0 }
 0x49b   :  { %v476_v41 = vmul.f32 0.125, %v472_v40  ;;  %v894_v42 = vpop.f32.mrb[7].mxu0 }
 0x49d   :  { %v477_v43 = vadd.f32 1e-05, %v476_v41 }
 0x49f   :  { %969 = vrsqrt.f32 %v477_v43 }
 0x4a9   :  { %v970_v44 = vpop.eup %969 }
 0x4aa   :  { %v482_v45 = vrot.slane %v970_v44, %v1210_v5 }
 0x4ac   :  { %v483_v46 = vmul.f32 %v482_v45, %v404_v32 }
 0x4ae   :  { %904 = vmatmul.mubr.msk.f32.vlgmr.msra.gmra.mrb[2].mxu1 %vm490_vm3, %v483_v46 }
 0x4af   :  { %932 = vmatprep.mubr.msk.f32.mxu1 %vm1098_vm0, %v1097_v0  ;;  %946 = vmatpush3.bf16.msra.mxu1 %v945_v60 }
 0x4b0   :  { %947 = vmatprep.subr.bf16.mxu1 %v1100_v15 }
 0x4b3   :  { %949 = vmatpush3.bf16.msra.mxu1 %v948_v63 }
 0x4b4   :  { %950 = vmatprep.subr.bf16.mxu1 %v1100_v15 }
 0x581   :  { %v560_v48 = vpop.f32.mrb[2].mxu1 }
 0x582   :  { %v561_v49 = vadd.f32 %v833_v47, %v560_v48  ;;  %v905_v50 = vpop.f32.mrb[3].mxu1 }
 0x584   :  { %v564_v51 = vmax.f32 %v561_v49, 0.0 }
 0x586   :  { %907 = vmatpush3.msra.mxu0 %v564_v51 }
 0x587   :  { %909 = vmatmul.mubr.msk.f32.vlgmr.msra.gmra.mrb[8].mxu0 %vm84_vm1, %v1099_v2  ;;  %911 = vmatprep.subr.mxu0 %v1097_v0 }
 0x588   :  { %913 = vmatprep.mubr.msk.f32.mxu0 %vm1098_vm0, %v1097_v0  ;;  %v569_v0 = vld [vmem:[#allocation8 + $0x20] sm:$0xff] }
 0x589   :  { %v951_v3 = vpack.c.bf16 %v570_v1, %v569_v0 }
 0x58b   :  { %952 = vmatpush3.bf16.msra.mxu1 %v951_v3 }
 0x58c   :  { %953 = vmatprep.subr.bf16.mxu1 %v1100_v15 }
 0x65a   :  { %v640_v52 = vpop.f32.mrb[8].mxu0 }
 0x65b   :  { %v644_v53 = vmul.f32 0.125, %v640_v52  ;;  %v910_v54 = vpop.f32.mrb[9].mxu0 }
 0x65d   :  { %v648_v55 = vrot.slane %v644_v53, %v1210_v5 }
 0x65f   :  { %v649_v56 = vsub.f32 %v564_v51, %v648_v55 }
 0x661   :  { %v650_v57 = vmul.f32 %v649_v56, %v649_v56 }
 0x663   :  { %912 = vmatpush3.msra.mxu0 %v650_v57 }
 0x664   :  { %914 = vmatmul.mubr.msk.f32.vlgmr.msra.gmra.mrb[10].mxu0 %vm84_vm1, %v1099_v2  ;;  %v572_v2 = vld [vmem:[#allocation8 + $0x38] sm:$0xff] }
 0x665   :  { %v954_v6 = vpack.c.bf16 %v572_v2, %v571_v4 }
 0x667   :  { %955 = vmatpush3.bf16.msra.mxu1 %v954_v6 }
 0x737   :  { %v717_v7 = vpop.f32.mrb[10].mxu0 }
 0x738   :  { %v721_v8 = vmul.f32 0.125, %v717_v7  ;;  %v915_v9 = vpop.f32.mrb[11].mxu0 }
 0x73a   :  { %v722_v10 = vadd.f32 1e-05, %v721_v8 }
 0x73c   :  { %971 = vrsqrt.f32 %v722_v10 }
 0x746   :  { %v972_v11 = vpop.eup %971 }
 0x747   :  { %v727_v12 = vrot.slane %v972_v11, %v1210_v5 }
 0x749   :  { %v728_v13 = vmul.f32 %v727_v12, %v649_v56 }
 0x74b   :  { %933 = vmatmul.mubr.msk.f32.vlgmr.msra.gmra.mrb[4].mxu1 %vm735_vm4, %v728_v13 }
 0x81e   :  { %v805_v15 = vpop.f32.mrb[4].mxu1 }
 0x81f   :  { %v806_v16 = vadd.f32 %v837_v14, %v805_v15  ;;  %v934_v17 = vpop.f32.mrb[5].mxu1 }
 0x821   :  { %809 = vst [vmem:[#allocation10] sm:$0xff] %v806_v16 }
 0x822   :  { %1072 = shalt.err (!%p1069_p8)
}
 0x823   :  { %s1073_s9 = scalar_lea.hbm %s1278_s7, 128 }
 0x824   :  { %p1074_p9 = scmp.ne.s32.totalorder %s1278_s7, %s1073_s9  ;;  %p1077_p10 = scmp.lt.u32.totalorder %s1073_s9, %s1278_s7 }
 0x826   :  { %p1079_p11 = pnand %p1077_p10, %p1074_p9 }
 0x828   :  { %1082 = shalt.err (!%p1079_p11)
}
 0x829   :  { %819 = dma.vmem_to_hbm [thread:$0]  %s817_s28, 128, %s1278_s7, [#allocation4]  }
 0x82a   :  { %1089 = dma.done.wait [#allocation4], 128  }
 0x82b   :  { %1090 = vsyncadd [#allocation4], 4294967168 }
 0x82c   :  { %823 = vsyncpa [#allocation3], 1 }
 0x82d   :  { %824 = vsyncpa [#allocation6], 1 }
 0x82e   :  { %825 = vsyncpa [#allocation9], 1 }
 0x82f   :  { %826 = vsyncpa [#allocation4], 1 }

// kernel: tpu_custom_call.1
= control target key start
LH: loop header
LB: loop body
LE: loop exit
PB: predicated region body
PF: predicated region fallthrough
CT: control target
= control target key end

     0   :  { %12 = vsyncpa [#allocation3], 0  ;;  %s1271_s0 = inlined_call_operand.hbm [shape: f32[8,16], index: 0, kind: input, shape index: {}]   ;;  %s1272_s1 = inlined_call_operand.hbm [shape: f32[16,32], index: 1, kind: input, shape index: {}]   ;;  %s1273_s2 = inlined_call_operand.vmem [shape: f32[1,32], index: 2, kind: input, shape index: {}]   ;;  %s1274_s3 = inlined_call_operand.hbm [shape: f32[32,64], index: 3, kind: input, shape index: {}]   ;;  %s1275_s4 = inlined_call_operand.vmem [shape: f32[1,64], index: 4, kind: input, shape index: {}]   ;;  %s1276_s5 = inlined_call_operand.hbm [shape: f32[64,128], index: 5, kind: input, shape index: {}]   ;;  %s1277_s6 = inlined_call_operand.vmem [shape: f32[1,128], index: 6, kind: input, shape index: {}]   ;;  %s1278_s7 = inlined_call_operand.hbm [shape: f32[8,128], index: 7, kind: output, shape index: {}]  }
   0x1   :  { %13 = vsyncpa [#allocation6], 0 }
   0x2   :  { %14 = vsyncpa [#allocation9], 0 }
   0x3   :  { %15 = vsyncpa [#allocation4], 0  ;;  %s1091_s24 = smov [#allocation5]   ;;  %s973_s28 = scalar_lea.hbm %s1272_s1, 256 }
   0x4   :  { %s31_s25 = sshll.u32 %s1091_s24, 4  ;;  %p974_p0 = scmp.ne.s32.totalorder %s1272_s1, %s973_s28  ;;  %s32_s25 = int_to_ptr.vmem [resolvable:$true] %s31_s25 }
   0x5   :  { %p977_p1 = scmp.lt.u32.totalorder %s973_s28, %s1272_s1 }
   0x7   :  { %p979_p2 = pnand %p977_p1, %p974_p0 }
   0x9   :  { %982 = shalt.err (!%p979_p2)
}
   0xa   :  { %s983_s10 = scalar_lea.vmem %s32_s25, 256  ;;  %p988_p4 = scmp.lt.s32.totalorder %s32_s25, %s32_s25 }
   0xb   :  { %p984_p3 = scmp.ne.s32.totalorder %s32_s25, %s983_s10  ;;  %p989_p5 = scmp.lt.s32.totalorder %s983_s10, %s983_s10 }
   0xd   :  { %p990_p6 = por %p989_p5, %p988_p4 }
   0xf   :  { %p991_p7 = pnand %p990_p6, %p984_p3 }
  0x11   :  { %994 = shalt.err (!%p991_p7)
}
  0x12   :  { %s1092_s11 = smov 128   ;;  %s1093_s12 = smov 8  }
  0x13   :  { %37 = dma.hbm_to_vmem [thread:$0]  %s1272_s1, 256, %s32_s25, [#allocation6], %s1092_s11, %s1092_s11, %s1093_s12  }
  0x14   :  { %s1094_s15 = smov [#allocation2]   ;;  %s1095_s17 = smov [#allocation7]  }
  0x15   :  { %s22_s16 = sshll.u32 %s1094_s15, 4  ;;  %s45_s18 = sshll.u32 %s1095_s17, 4  ;;  %s23_s16 = int_to_ptr.vmem [resolvable:$true] %s22_s16  ;;  %s46_s18 = int_to_ptr.vmem [resolvable:$true] %s45_s18 }
  0x16   :  { %s995_s21 = scalar_lea.hbm %s1271_s0, 128 }
  0x17   :  { %p996_p8 = scmp.ne.s32.totalorder %s1271_s0, %s995_s21  ;;  %p999_p9 = scmp.lt.u32.totalorder %s995_s21, %s1271_s0 }
  0x19   :  { %p1001_p10 = pnand %p999_p9, %p996_p8 }
  0x1b   :  { %1004 = shalt.err (!%p1001_p10)
}
  0x1c   :  { %s1005_s1 = scalar_lea.vmem %s23_s16, 128  ;;  %p1010_p12 = scmp.lt.s32.totalorder %s23_s16, %s23_s16 }
  0x1d   :  { %p1006_p11 = scmp.ne.s32.totalorder %s23_s16, %s1005_s1  ;;  %p1011_p13 = scmp.lt.s32.totalorder %s1005_s1, %s1005_s1 }
  0x1f   :  { %p1012_p0 = por %p1011_p13, %p1010_p12 }
  0x21   :  { %p1013_p1 = pnand %p1012_p0, %p1006_p11 }
  0x23   :  { %1016 = shalt.err (!%p1013_p1)
}
  0x24   :  { %25 = dma.hbm_to_vmem [thread:$0]  %s1271_s0, 128, %s23_s16, [#allocation3]  }
  0x25   :  { %s1017_s30 = scalar_lea.hbm %s1274_s3, 512 }
  0x26   :  { %p1018_p2 = scmp.ne.s32.totalorder %s1274_s3, %s1017_s30  ;;  %p1021_p3 = scmp.lt.u32.totalorder %s1017_s30, %s1274_s3 }
  0x28   :  { %p1023_p4 = pnand %p1021_p3, %p1018_p2 }
  0x2a   :  { %1026 = shalt.err (!%p1023_p4)
}
  0x2b   :  { %s1027_s14 = scalar_lea.vmem %s46_s18, 512  ;;  %p1032_p6 = scmp.lt.s32.totalorder %s46_s18, %s46_s18 }
  0x2c   :  { %p1028_p5 = scmp.ne.s32.totalorder %s46_s18, %s1027_s14  ;;  %p1033_p7 = scmp.lt.s32.totalorder %s1027_s14, %s1027_s14 }
  0x2e   :  { %p1034_p8 = por %p1033_p7, %p1032_p6 }
  0x30   :  { %p1035_p9 = pnand %p1034_p8, %p1028_p5 }
  0x32   :  { %1038 = shalt.err (!%p1035_p9)
}
  0x33   :  { %51 = dma.hbm_to_vmem [thread:$0]  %s1274_s3, 512, %s46_s18, [#allocation6], %s1092_s11, %s1092_s11, %s1093_s12  }
  0x34   :  { %s1096_s16 = smov [#allocation8]   ;;  %s1039_s21 = scalar_lea.hbm %s1276_s5, 1024 }
  0x35   :  { %s59_s17 = sshll.u32 %s1096_s16, 4  ;;  %p1040_p10 = scmp.ne.s32.totalorder %s1276_s5, %s1039_s21  ;;  %s60_s17 = int_to_ptr.vmem [resolvable:$true] %s59_s17 }
  0x36   :  { %p1043_p11 = scmp.lt.u32.totalorder %s1039_s21, %s1276_s5 }
  0x38   :  { %p1045_p12 = pnand %p1043_p11, %p1040_p10 }
  0x3a   :  { %1048 = shalt.err (!%p1045_p12)
}
  0x3b   :  { %s1049_s1 = scalar_lea.vmem %s60_s17, 1024  ;;  %p1054_p0 = scmp.lt.s32.totalorder %s60_s17, %s60_s17 }
  0x3c   :  { %p1050_p13 = scmp.ne.s32.totalorder %s60_s17, %s1049_s1  ;;  %p1055_p1 = scmp.lt.s32.totalorder %s1049_s1, %s1049_s1 }
  0x3e   :  { %p1056_p2 = por %p1055_p1, %p1054_p0 }
  0x40   :  { %p1057_p3 = pnand %p1056_p2, %p1050_p13 }
  0x42   :  { %1060 = shalt.err (!%p1057_p3)
}
  0x43   :  { %65 = dma.hbm_to_vmem [thread:$0]  %s1276_s5, 1024, %s60_s17, [#allocation9], %s1092_s11, %s1092_s11, %s1093_s12  }
  0x44   :  { %1083 = dma.done.wait [#allocation3], 128  }
  0x45   :  { %1084 = vsyncadd [#allocation3], 4294967168 }
  0x46   :  { %1085 = dma.done.wait [#allocation6], 768  }
  0x47   :  { %1086 = vsyncadd [#allocation6], 4294966528 }
  0x48   :  { %1087 = dma.done.wait [#allocation9], 1024  }
  0x49   :  { %1088 = vsyncadd [#allocation9], 4294966272  ;;  %v1097_v0 = vmov 0.0   ;;  %vm1098_vm0 = vmmov 0   ;;  %vm84_vm1 = vcmask 64512   ;;  %v80_v1 = vld [vmem:[#allocation2] sm:$0xff]  ;;  %v159_v3 = vlaneseq }
  0x4a   :  { %868 = vmatprep.subr.mxu0 %v1097_v0  ;;  %870 = vmatprep.mubr.msk.f32.mxu0 %vm1098_vm0, %v1097_v0  ;;  %v1099_v2 = vmov 1.0   ;;  %v81_v12 = vld [vmem:[#allocation5] sm:$0xff]  ;;  %v82_v13 = vld [vmem:[#allocation5 + $0x8] sm:$0xff]  ;;  %v1100_v15 = vmov 0.0|0.0   ;;  %vm249_vm2 = vcmask 130048   ;;  %v324_v34 = vld [vmem:[#allocation7] sm:$0xff] }
  0x4b   :  { %885 = vmatprep.subr.mxu1 %v1097_v0  ;;  %887 = vmatprep.mubr.msk.f32.mxu1 %vm1098_vm0, %v1097_v0  ;;  %v160_v4 = vshrl.u32 %v159_v3, 7  ;;  %v936_v14 = vpack.c.bf16 %v82_v13, %v81_v12  ;;  %v829_v23 = vld [vmem:[%s1273_s2] ss:$0 sm:$0xff]  ;;  %v326_v37 = vld [vmem:[#allocation7 + $0x10] sm:$0xff]  ;;  %v327_v38 = vld [vmem:[#allocation7 + $0x18] sm:$0xff]  ;;  %vm490_vm3 = vcmask 261120  }
  0x4c   :  { %869 = vmatpush3.msra.mxu0 %v80_v1  ;;  %v325_v35 = vld [vmem:[#allocation7 + $0x8] sm:$0xff]  ;;  %v942_v39 = vpack.c.bf16 %v327_v38, %v326_v37  ;;  %v565_v58 = vld [vmem:[#allocation8] sm:$0xff]  ;;  %v567_v61 = vld [vmem:[#allocation8 + $0x10] sm:$0xff]  ;;  %vm735_vm4 = vcmask 523264   ;;  %s1101_s27 = smov [#allocation10]  }
  0x4d   :  { %871 = vmatmul.mubr.msk.f32.vlgmr.msra.gmra.mrb[0].mxu0 %vm84_vm1, %v1099_v2  ;;  %873 = vmatprep.subr.mxu0 %v1097_v0  ;;  %v1210_v5 = vsub.s32 0, %v160_v4  ;;  %v939_v36 = vpack.c.bf16 %v325_v35, %v324_v34  ;;  %v833_v47 = vld [vmem:[%s1275_s4] ss:$0 sm:$0xff]  ;;  %v568_v62 = vld [vmem:[#allocation8 + $0x18] sm:$0xff]  ;;  %v571_v4 = vld [vmem:[#allocation8 + $0x30] sm:$0xff]  ;;  %s816_s28 = sshll.u32 %s1101_s27, 4  ;;  %s817_s28 = int_to_ptr.vmem [resolvable:$true] %s816_s28 }
  0x4e   :  { %875 = vmatprep.mubr.msk.f32.mxu0 %vm1098_vm0, %v1097_v0  ;;  %v566_v59 = vld [vmem:[#allocation8 + $0x8] sm:$0xff]  ;;  %v948_v63 = vpack.c.bf16 %v568_v62, %v567_v61  ;;  %s1061_s29 = scalar_lea.vmem %s817_s28, 128  ;;  %p1066_p5 = scmp.lt.s32.totalorder %s817_s28, %s817_s28 }
  0x4f   :  { %v945_v60 = vpack.c.bf16 %v566_v59, %v565_v58  ;;  %p1062_p4 = scmp.ne.s32.totalorder %s817_s28, %s1061_s29  ;;  %p1067_p6 = scmp.lt.s32.totalorder %s1061_s29, %s1061_s29 }
  0x51   :  { %p1068_p7 = por %p1067_p6, %p1066_p5 }
  0x53   :  { %p1069_p8 = pnand %p1068_p7, %p1062_p4 }
 0x120   :  { %v154_v6 = vpop.f32.mrb[0].mxu0 }
 0x121   :  { %v158_v7 = vmul.f32 0.125, %v154_v6  ;;  %v872_v8 = vpop.f32.mrb[1].mxu0 }
 0x123   :  { %v162_v9 = vrot.slane %v158_v7, %v1210_v5 }
 0x125   :  { %v163_v10 = vsub.f32 %v80_v1, %v162_v9  ;;  %v570_v1 = vld [vmem:[#allocation8 + $0x28] sm:$0xff] }
 0x127   :  { %v164_v11 = vmul.f32 %v163_v10, %v163_v10 }
 0x129   :  { %874 = vmatpush3.msra.mxu0 %v164_v11 }
 0x12a   :  { %876 = vmatmul.mubr.msk.f32.vlgmr.msra.gmra.mrb[2].mxu0 %vm84_vm1, %v1099_v2  ;;  %935 = vmatprep.subr.bf16.mxu0 %v1100_v15 }
 0x12b   :  { %882 = vmatprep.mubr.msk.f32.mxu0 %vm1098_vm0, %v1097_v0  ;;  %937 = vmatpush3.bf16.msra.mxu0 %v936_v14  ;;  %v837_v14 = vld [vmem:[%s1277_s6] ss:$0 sm:$0xff] }
 0x12c   :  { %890 = vmatprep.subr.mxu0 %v1097_v0 }
 0x1fd   :  { %v231_v16 = vpop.f32.mrb[2].mxu0 }
 0x1fe   :  { %v235_v17 = vmul.f32 0.125, %v231_v16  ;;  %v877_v18 = vpop.f32.mrb[3].mxu0 }
 0x200   :  { %v236_v19 = vadd.f32 1e-05, %v235_v17 }
 0x202   :  { %967 = vrsqrt.f32 %v236_v19 }
 0x20c   :  { %v968_v20 = vpop.eup %967 }
 0x20d   :  { %v241_v21 = vrot.slane %v968_v20, %v1210_v5 }
 0x20f   :  { %v242_v22 = vmul.f32 %v241_v21, %v163_v10 }
 0x211   :  { %883 = vmatmul.mubr.msk.f32.vlgmr.msra.gmra.mrb[4].mxu0 %vm249_vm2, %v242_v22 }
 0x212   :  { %892 = vmatprep.mubr.msk.f32.mxu0 %vm1098_vm0, %v1097_v0 }
 0x2e4   :  { %v319_v24 = vpop.f32.mrb[4].mxu0 }
 0x2e5   :  { %v320_v25 = vadd.f32 %v829_v23, %v319_v24  ;;  %v884_v26 = vpop.f32.mrb[5].mxu0 }
 0x2e7   :  { %v323_v27 = vmax.f32 %v320_v25, 0.0 }
 0x2e9   :  { %886 = vmatpush3.msra.mxu1 %v323_v27 }
 0x2ea   :  { %888 = vmatmul.mubr.msk.f32.vlgmr.msra.gmra.mrb[0].mxu1 %vm84_vm1, %v1099_v2  ;;  %938 = vmatprep.subr.bf16.mxu1 %v1100_v15 }
 0x2eb   :  { %903 = vmatprep.mubr.msk.f32.mxu1 %vm1098_vm0, %v1097_v0  ;;  %940 = vmatpush3.bf16.msra.mxu1 %v939_v36 }
 0x2ec   :  { %941 = vmatprep.subr.bf16.mxu1 %v1100_v15 }
 0x2ef   :  { %943 = vmatpush3.bf16.msra.mxu1 %v942_v39 }
 0x2f0   :  { %944 = vmatprep.subr.bf16.mxu1 %v1100_v15 }
 0x3bd   :  { %v395_v28 = vpop.f32.mrb[0].mxu1 }
 0x3be   :  { %v399_v29 = vmul.f32 0.125, %v395_v28  ;;  %v889_v30 = vpop.f32.mrb[1].mxu1 }
 0x3c0   :  { %v403_v31 = vrot.slane %v399_v29, %v1210_v5 }
 0x3c2   :  { %v404_v32 = vsub.f32 %v323_v27, %v403_v31 }
 0x3c4   :  { %v405_v33 = vmul.f32 %v404_v32, %v404_v32 }
 0x3c6   :  { %891 = vmatpush3.msra.mxu0 %v405_v33 }
 0x3c7   :  { %893 = vmatmul.mubr.msk.f32.vlgmr.msra.gmra.mrb[6].mxu0 %vm84_vm1, %v1099_v2  ;;  %906 = vmatprep.subr.mxu0 %v1097_v0 }
 0x3c8   :  { %908 = vmatprep.mubr.msk.f32.mxu0 %vm1098_vm0, %v1097_v0 }
 0x49a   :  { %v472_v40 = vpop.f32.mrb[6].mxu0 }
 0x49b   :  { %v476_v41 = vmul.f32 0.125, %v472_v40  ;;  %v894_v42 = vpop.f32.mrb[7].mxu0 }
 0x49d   :  { %v477_v43 = vadd.f32 1e-05, %v476_v41 }
 0x49f   :  { %969 = vrsqrt.f32 %v477_v43 }
 0x4a9   :  { %v970_v44 = vpop.eup %969 }
 0x4aa   :  { %v482_v45 = vrot.slane %v970_v44, %v1210_v5 }
 0x4ac   :  { %v483_v46 = vmul.f32 %v482_v45, %v404_v32 }
 0x4ae   :  { %904 = vmatmul.mubr.msk.f32.vlgmr.msra.gmra.mrb[2].mxu1 %vm490_vm3, %v483_v46 }
 0x4af   :  { %932 = vmatprep.mubr.msk.f32.mxu1 %vm1098_vm0, %v1097_v0  ;;  %946 = vmatpush3.bf16.msra.mxu1 %v945_v60 }
 0x4b0   :  { %947 = vmatprep.subr.bf16.mxu1 %v1100_v15 }
 0x4b3   :  { %949 = vmatpush3.bf16.msra.mxu1 %v948_v63 }
 0x4b4   :  { %950 = vmatprep.subr.bf16.mxu1 %v1100_v15 }
 0x581   :  { %v560_v48 = vpop.f32.mrb[2].mxu1 }
 0x582   :  { %v561_v49 = vadd.f32 %v833_v47, %v560_v48  ;;  %v905_v50 = vpop.f32.mrb[3].mxu1 }
 0x584   :  { %v564_v51 = vmax.f32 %v561_v49, 0.0 }
 0x586   :  { %907 = vmatpush3.msra.mxu0 %v564_v51 }
 0x587   :  { %909 = vmatmul.mubr.msk.f32.vlgmr.msra.gmra.mrb[8].mxu0 %vm84_vm1, %v1099_v2  ;;  %911 = vmatprep.subr.mxu0 %v1097_v0 }
 0x588   :  { %913 = vmatprep.mubr.msk.f32.mxu0 %vm1098_vm0, %v1097_v0  ;;  %v569_v0 = vld [vmem:[#allocation8 + $0x20] sm:$0xff] }
 0x589   :  { %v951_v3 = vpack.c.bf16 %v570_v1, %v569_v0 }
 0x58b   :  { %952 = vmatpush3.bf16.msra.mxu1 %v951_v3 }
 0x58c   :  { %953 = vmatprep.subr.bf16.mxu1 %v1100_v15 }
 0x65a   :  { %v640_v52 = vpop.f32.mrb[8].mxu0 }
 0x65b   :  { %v644_v53 = vmul.f32 0.125, %v640_v52  ;;  %v910_v54 = vpop.f32.mrb[9].mxu0 }
 0x65d   :  { %v648_v55 = vrot.slane %v644_v53, %v1210_v5 }
 0x65f   :  { %v649_v56 = vsub.f32 %v564_v51, %v648_v55 }
 0x661   :  { %v650_v57 = vmul.f32 %v649_v56, %v649_v56 }
 0x663   :  { %912 = vmatpush3.msra.mxu0 %v650_v57 }
 0x664   :  { %914 = vmatmul.mubr.msk.f32.vlgmr.msra.gmra.mrb[10].mxu0 %vm84_vm1, %v1099_v2  ;;  %v572_v2 = vld [vmem:[#allocation8 + $0x38] sm:$0xff] }
 0x665   :  { %v954_v6 = vpack.c.bf16 %v572_v2, %v571_v4 }
 0x667   :  { %955 = vmatpush3.bf16.msra.mxu1 %v954_v6 }
 0x737   :  { %v717_v7 = vpop.f32.mrb[10].mxu0 }
 0x738   :  { %v721_v8 = vmul.f32 0.125, %v717_v7  ;;  %v915_v9 = vpop.f32.mrb[11].mxu0 }
 0x73a   :  { %v722_v10 = vadd.f32 1e-05, %v721_v8 }
 0x73c   :  { %971 = vrsqrt.f32 %v722_v10 }
 0x746   :  { %v972_v11 = vpop.eup %971 }
 0x747   :  { %v727_v12 = vrot.slane %v972_v11, %v1210_v5 }
 0x749   :  { %v728_v13 = vmul.f32 %v727_v12, %v649_v56 }
 0x74b   :  { %933 = vmatmul.mubr.msk.f32.vlgmr.msra.gmra.mrb[4].mxu1 %vm735_vm4, %v728_v13 }
 0x81e   :  { %v805_v15 = vpop.f32.mrb[4].mxu1 }
 0x81f   :  { %v806_v16 = vadd.f32 %v837_v14, %v805_v15  ;;  %v934_v17 = vpop.f32.mrb[5].mxu1 }
 0x821   :  { %809 = vst [vmem:[#allocation10] sm:$0xff] %v806_v16 }
 0x822   :  { %1072 = shalt.err (!%p1069_p8)
}
 0x823   :  { %s1073_s9 = scalar_lea.hbm %s1278_s7, 128 }
 0x824   :  { %p1074_p9 = scmp.ne.s32.totalorder %s1278_s7, %s1073_s9  ;;  %p1077_p10 = scmp.lt.u32.totalorder %s1073_s9, %s1278_s7 }
 0x826   :  { %p1079_p11 = pnand %p1077_p10, %p1074_p9 }
 0x828   :  { %1082 = shalt.err (!%p1079_p11)
}
 0x829   :  { %819 = dma.vmem_to_hbm [thread:$0]  %s817_s28, 128, %s1278_s7, [#allocation4]  }
 0x82a   :  { %1089 = dma.done.wait [#allocation4], 128  }
 0x82b   :  { %1090 = vsyncadd [#allocation4], 4294967168 }
 0x82c   :  { %823 = vsyncpa [#allocation3], 1 }
 0x82d   :  { %824 = vsyncpa [#allocation6], 1 }
 0x82e   :  { %825 = vsyncpa [#allocation9], 1 }
 0x82f   :  { %826 = vsyncpa [#allocation4], 1 }

</bundles_post_ra>
